<compile_context>
chip_gen: v5e
topology: v5e:2x2
jax: 0.10.0
libtpu: 0.0.40
codegen_flags: <defaults>
</compile_context>

<pallas_src>
import jax
import jax.numpy as jnp
from jax.experimental import pallas as pl
from jax.experimental.pallas import tpu as pltpu


def _round_up(a, m):
    return ((a + m - 1) // m) * m


def _vmem_budget_bytes():
    """Combined budget for the double-buffered X + output pipeline buffers."""
    cap = 64 * 1024 * 1024                      # conservative default: v7x physical VMEM
    try:
        cap = int(pltpu.get_tpu_info().vmem_capacity_bytes)
    except Exception:
        pass
    # Leave half of physical VMEM for the compiler / misc scratch, and never ask
    # for more than 48 MiB of pipeline buffers even on 128 MiB parts.
    return min(cap // 2, 48 * 1024 * 1024)


def _choose_tile_rows(n_rows, width, budget_bytes):
    """Rows of the (lane-packed) X view processed per grid step."""
    x_lanes = _round_up(width, 128)             # X block lane width in VMEM
    out_lanes = 128                             # output block is lane-padded to 128
    bytes_per_row = 2 * 4 * (x_lanes + out_lanes)   # f32, double-buffered X + out
    tm = max(budget_bytes // bytes_per_row, 8)
    # Keep at least 2 grid steps when the batch allows it so the "parallel"
    # grid axis can shard across both TensorCores on v7x (no effect on
    # single-TC v5e/v6e beyond one extra ~0.35us grid step).
    tm = min(tm, _round_up(-(-n_rows // 2), 8))
    tm = max((tm // 8) * 8, 8)                  # sublane multiple
    if tm >= n_rows:
        return n_rows                           # single full block (any size OK)
    return tm


def _linreg_kernel(bias_ref, x_ref, w_ref, o_ref):
    # bias_ref: (1,)          f32 SMEM scalar (tau already folded in)
    # x_ref:    (TM, width)   f32 lane-packed X row tile (streamed, double-buffered)
    # w_ref:    (width, pack) f32 block-diagonal weight (tau folded in, resident)
    # o_ref:    (TM, pack)    f32 outputs; (row r, col j) -> original row r*pack + j
    z = jnp.dot(x_ref[...], w_ref[...], preferred_element_type=jnp.float32)
    o_ref[...] = jax.nn.sigmoid(z + bias_ref[0])


@jax.jit
def linear_regression_forward(x, weights, bias, tau=1.0):
    """x: (N, D), weights: (D,), bias: (1,), tau: scalar. Returns (N,) float32."""
    x = x.astype(jnp.float32)                            # mirrors X.type(torch.float)
    n, d = x.shape
    tau = jnp.asarray(tau, dtype=jnp.float32)
    w = (tau * weights.astype(jnp.float32)).reshape(d)   # fold tau into weights
    b = (tau * bias.astype(jnp.float32)).reshape(1)      # fold tau into bias

    # Lane-pack the feature axis: `pack` consecutive rows of X become one wide
    # row via a free reshape of the contiguous row-major array.  Only useful
    # when D < 128; ragged batches fall back to a smaller pack (no jnp.pad).
    pack = 1
    if d < 128:
        for p in (4, 2):
            if n % p == 0:
                pack = p
                break
    n_rows = n // pack
    width = pack * d
    x_view = x.reshape(n_rows, width)
    # Block-diagonal weight: (X_view @ w_block)[r, j] == (X @ w)[r*pack + j].
    w_block = jnp.kron(jnp.eye(pack, dtype=jnp.float32), w.reshape(d, 1))  # (width, pack)

    budget = _vmem_budget_bytes()
    tm = _choose_tile_rows(n_rows, width, budget)
    num_tiles = pl.cdiv(n_rows, tm)   # ragged tail handled as a partial final block

    out = pl.pallas_call(
        _linreg_kernel,
        out_shape=jax.ShapeDtypeStruct((n_rows, pack), jnp.float32),
        grid=(num_tiles,),
        in_specs=[
            pl.BlockSpec(memory_space=pltpu.SMEM),            # tau*bias scalar
            pl.BlockSpec((tm, width), lambda i: (i, 0)),      # X tile (streams)
            pl.BlockSpec((width, pack), lambda i: (0, 0)),    # weight (resident)
        ],
        out_specs=pl.BlockSpec((tm, pack), lambda i: (i, 0)),
        compiler_params=pltpu.CompilerParams(
            dimension_semantics=("parallel",),                # megacore split on v7x
            vmem_limit_bytes=budget + 16 * 1024 * 1024,       # 48 MiB v7x / 64 MiB v5e,v6e
        ),
        cost_estimate=pl.CostEstimate(
            flops=2 * n * d + n,
            transcendentals=n,
            bytes_accessed=n * d * 4 + n * 4 + width * pack * 4 + 4,
        ),
    )(b, x_view, w_block)
    return out.reshape(n)


if __name__ == "__main__":
    # Deterministic parameter init (normal_(mean=0, std=1) equivalent).
    n_features = 32
    tau = 1.0

    key = jax.random.PRNGKey(0)
    k_w, k_b, k_x = jax.random.split(key, 3)
    weights = jax.random.normal(k_w, (n_features,), dtype=jnp.float32)
    bias = jax.random.normal(k_b, (1,), dtype=jnp.float32)

    def reference(xv):
        return jax.nn.sigmoid(tau * (xv.astype(jnp.float32) @ weights + bias[0]))

    # batch=8: tiny single block; batch=300/2500: multi-tile grids with a ragged
    # final block on the pack=4 path; batch=301: odd batch -> pack=1 fallback.
    for batch in (8, 300, 301, 2500):
        kx = jax.random.fold_in(k_x, batch)
        x = jax.random.normal(kx, (batch, n_features), dtype=jnp.float32)
        y = linear_regression_forward(x, weights, bias, tau)
        jax.block_until_ready(y)
        y_ref = reference(x)
        assert y.shape == (batch,), (y.shape, batch)
        assert jnp.allclose(y, y_ref, atol=1e-5, rtol=1e-5), (
            f"mismatch at batch={batch}: "
            f"max abs err {float(jnp.max(jnp.abs(y - y_ref)))}")

    print("KERNEL_OK")
</pallas_src>

<mosaic_0001>
module attributes {stable_mosaic.version = 11 : i64} {
  func.func @_linreg_kernel(%arg0: i32, %arg1: memref<1xf32, #tpu.memory_space<smem>>, %arg2: memref<2x128xf32, #tpu.memory_space<vmem>>, %arg3: memref<128x4xf32, #tpu.memory_space<vmem>>, %arg4: memref<2x4xf32, #tpu.memory_space<vmem>>) attributes {dimension_semantics = [#tpu.dimension_semantics<parallel>], iteration_bounds = array<i64: 1>, scalar_prefetch = 0 : i64, scratch_operands = 0 : i64, tpu.core_type = #tpu.core_type<tc>, window_params = [{transform_indices = @transform_0, window_bounds = array<i64: 1>}, {transform_indices = @transform_1, window_bounds = array<i64: 2, 128>}, {pipeline_mode = #tpu.pipeline_mode<synchronous>, transform_indices = @transform_2, window_bounds = array<i64: 128, 4>}, {transform_indices = @transform_3, window_bounds = array<i64: 2, 4>}]} {
    %c0 = arith.constant 0 : index
    %c0_0 = arith.constant 0 : index
    %0 = vector.load %arg2[%c0, %c0_0] : memref<2x128xf32, #tpu.memory_space<vmem>>, vector<2x128xf32>
    %c0_1 = arith.constant 0 : index
    %c0_2 = arith.constant 0 : index
    %1 = vector.load %arg3[%c0_1, %c0_2] : memref<128x4xf32, #tpu.memory_space<vmem>>, vector<128x4xf32>
    %cst = arith.constant dense<0.000000e+00> : vector<2x4xf32>
    %2 = tpu.matmul %0, %1, %cst {dimension_numbers = #tpu.dot_dimension_numbers<[1], [0], [0], [1], [0, 0, 1, 1], [], []>} : vector<2x128xf32>, vector<128x4xf32>, vector<2x4xf32> -> vector<2x4xf32>
    %c0_3 = arith.constant 0 : index
    %3 = memref.load %arg1[%c0_3] : memref<1xf32, #tpu.memory_space<smem>>
    %4 = vector.broadcast %3 : f32 to vector<2x4xf32>
    %5 = arith.addf %2, %4 : vector<2x4xf32>
    %6 = arith.negf %5 : vector<2x4xf32>
    %7 = math.exp %6 : vector<2x4xf32>
    %cst_4 = arith.constant 1.000000e+00 : f32
    %8 = vector.broadcast %cst_4 : f32 to vector<2x4xf32>
    %9 = arith.addf %8, %7 : vector<2x4xf32>
    %10 = arith.divf %8, %9 : vector<2x4xf32>
    %c0_5 = arith.constant 0 : index
    %c0_6 = arith.constant 0 : index
    %11 = vector.load %arg4[%c0_5, %c0_6] : memref<2x4xf32, #tpu.memory_space<vmem>>, vector<2x4xf32>
    tpu.vector_store %arg4[%c0_5, %c0_6], %10 {strides = array<i32>} : memref<2x4xf32, #tpu.memory_space<vmem>>, vector<2x4xf32>,
    return
  }
  func.func @transform_0(%arg0: i32) -> i32 {
    %c0_i32 = arith.constant 0 : i32
    %c0_i32_0 = arith.constant 0 : i32
    return %c0_i32 : i32
  }
  func.func @transform_1(%arg0: i32) -> (i32, i32) {
    %c0_i32 = arith.constant 0 : i32
    %c0_i32_0 = arith.constant 0 : i32
    return %arg0, %c0_i32 : i32, i32
  }
  func.func @transform_2(%arg0: i32) -> (i32, i32) {
    %c0_i32 = arith.constant 0 : i32
    %c0_i32_0 = arith.constant 0 : i32
    %c0_i32_1 = arith.constant 0 : i32
    return %c0_i32, %c0_i32_0 : i32, i32
  }
  func.func @transform_3(%arg0: i32) -> (i32, i32) {
    %c0_i32 = arith.constant 0 : i32
    %c0_i32_0 = arith.constant 0 : i32
    return %arg0, %c0_i32 : i32, i32
  }
}

</mosaic_0001>

<bundles_post_ra>
// kernel: linear_regression_forward.1
= control target key start
LH: loop header
LB: loop body
LE: loop exit
PB: predicated region body
PF: predicated region fallthrough
CT: control target
= control target key end

     0   :  { %vm73_vm3 = vcmask 25600   ;;  %s161_s2 = inlined_call_operand.vmem [shape: f32[128,4], index: 2, kind: input, shape index: {}]   ;;  %s162_s1 = inlined_call_operand.vmem [shape: f32[2,128], index: 1, kind: input, shape index: {}]   ;;  %s163_s0 = inlined_call_operand.<no memory space> [shape: f32[1], index: 0, kind: input, shape index: {}]   ;;  %s164_s3 = inlined_call_operand.vmem [shape: f32[2,4], index: 3, kind: output, shape index: {}]  }
   0x1   :  { %v31_v0 = vld [vmem:[%s161_s2 + $0x78] sm:$0xff]  ;;  %v30_v1 = vld [vmem:[%s161_s2 + $0x70] sm:$0xff]  ;;  %v29_v2 = vld [vmem:[%s161_s2 + $0x68] sm:$0xff]  ;;  %v33_v17 = vstv %s163_s0 }
   0x2   :  { %34 = vmatpush.msra.mxu0 %v31_v0  ;;  %v28_v3 = vld [vmem:[%s161_s2 + $0x60] sm:$0xff]  ;;  %v27_v4 = vld [vmem:[%s161_s2 + $0x58] sm:$0xff]  ;;  %v26_v5 = vld [vmem:[%s161_s2 + $0x50] sm:$0xff] }
   0x3   :  { %v25_v6 = vld [vmem:[%s161_s2 + $0x48] sm:$0xff]  ;;  %v24_v7 = vld [vmem:[%s161_s2 + $0x40] sm:$0xff]  ;;  %v23_v8 = vld [vmem:[%s161_s2 + $0x38] sm:$0xff] }
   0x4   :  { %35 = vmatpush.msra.mxu0 %v30_v1  ;;  %v22_v9 = vld [vmem:[%s161_s2 + $0x30] sm:$0xff]  ;;  %v21_v10 = vld [vmem:[%s161_s2 + $0x28] sm:$0xff]  ;;  %v20_v11 = vld [vmem:[%s161_s2 + $0x20] sm:$0xff] }
   0x5   :  { %v19_v12 = vld [vmem:[%s161_s2 + $0x18] sm:$0xff]  ;;  %v18_v13 = vld [vmem:[%s161_s2 + $0x10] sm:$0xff]  ;;  %v17_v14 = vld [vmem:[%s161_s2 + $0x8] sm:$0xff] }
   0x6   :  { %36 = vmatpush.msra.mxu0 %v29_v2  ;;  %v16_v15 = vld [vmem:[%s161_s2] sm:$0xff] }
   0x7   :  { %v15_v16 = vld [vmem:[%s162_s1] sm:$0x3] }
   0x8   :  { %37 = vmatpush.msra.mxu0 %v28_v3 }
   0xa   :  { %38 = vmatpush.msra.mxu0 %v27_v4 }
   0xc   :  { %39 = vmatpush.msra.mxu0 %v26_v5 }
   0xe   :  { %40 = vmatpush.msra.mxu0 %v25_v6 }
  0x10   :  { %41 = vmatpush.msra.mxu0 %v24_v7 }
  0x12   :  { %42 = vmatpush.msra.mxu0 %v23_v8 }
  0x14   :  { %43 = vmatpush.msra.mxu0 %v22_v9 }
  0x16   :  { %44 = vmatpush.msra.mxu0 %v21_v10 }
  0x18   :  { %45 = vmatpush.msra.mxu0 %v20_v11 }
  0x1a   :  { %46 = vmatpush.msra.mxu0 %v19_v12 }
  0x1c   :  { %47 = vmatpush.msra.mxu0 %v18_v13 }
  0x1e   :  { %48 = vmatpush.msra.mxu0 %v17_v14 }
  0x20   :  { %49 = vmatpush.msra.mxu0 %v16_v15 }
  0x21   :  { %50 = vmatmul.f32.vlgmr.msra.gmra.mxu0 %v15_v16 }
  0x9e   :  { %v51_v18 = vpop.f32.mrf.mxu0 }
  0x9f   :  { %v52_v19 = vadd.f32 %v51_v18, %v33_v17 }
  0xa1   :  { %v79_v20 = vmul.f32 -1.442695, %v52_v19 }
  0xa3   :  { %80 = vpow2.f32 %v79_v20 }
  0xa9   :  { %v81_v21 = vpop.eup %80 }
  0xaa   :  { %v57_v22 = vadd.f32 1.0, %v81_v21 }
  0xac   :  { %82 = vrcp.f32 %v57_v22  ;;  %v69_v26 = vand.u32 2147483648, %v57_v22  ;;  %v67_v28 = vand.u32 2147483647, %v57_v22  ;;  %vm63_vm1 = vweird.f32 %v57_v22 }
  0xae   :  { %v70_v30 = vor.u32 1.1754944e-38, %v69_v26  ;;  %vm68_vm4 = vcmp.eq.f32.partialorder %v67_v28, 8.507059e+37 }
  0xb2   :  { %v83_v23 = vpop.eup %82 }
  0xb3   :  { %v59_v24 = vmul.f32 %v83_v23, %v57_v22  ;;  %vm64_vm0 = vweird.f32 %v83_v23 }
  0xb4   :  { %vm65_vm2 = vmor %vm63_vm1, %vm64_vm0 }
  0xb5   :  { %v60_v25 = vsub.f32 1.0, %v59_v24 }
  0xb7   :  { %v61_v27 = vmul.f32 %v83_v23, %v60_v25 }
  0xb9   :  { %v62_v29 = vadd.f32 %v83_v23, %v61_v27 }
  0xbb   :  { %v66_v31 = vsel %vm65_vm2, %v83_v23, %v62_v29 }
  0xbc   :  { %v71_v32 = vsel %vm68_vm4, %v70_v30, %v66_v31 }
  0xbd   :  { %74 = vst.msk [vmem:[%s164_s3] sm:$0x3] %vm73_vm3, %v71_v32 }

</bundles_post_ra>
